<compile_context>
chip_gen: v7x
topology: tpu7x:2x2x1
jax: 0.10.0
libtpu: 0.0.40
codegen_flags: <defaults>
</compile_context>

<pallas_src>
import functools

import jax
import jax.numpy as jnp
from jax import lax
from jax.experimental import pallas as pl
from jax.experimental.pallas import tpu as pltpu


_VMEM_INPUT_BUDGET = 24 * 1024 * 1024   # bytes: double-buffered blocks + f32 temps
_VMEM_LIMIT = 40 * 1024 * 1024          # scoped VMEM limit (safe on v5e/v6e/v7x)
_TGT_LANE_BYTES = 128 * 4               # (tn,1) f32 target block lane-pads to 128 lanes


def _round_up(x, m):
    return -(-x // m) * m


def _default_core_split():
    """Use a 2-way 'parallel' grid axis only on v7x (2 TensorCores/chip)."""
    try:
        kind = jax.devices()[0].device_kind.lower()
    except Exception:
        return 1
    return 2 if "v7" in kind else 1


def _choose_tiling(n, d, itemsize, p, tn_override=None):
    """Pick (row_tile, n_parallel, steps_per_core, n_blocks) for an (n, d) problem."""
    if tn_override is not None:
        tn = max(8, _round_up(int(tn_override), 8))
    else:
        # Per-row VMEM bytes: double-buffered q+k input blocks, the lane-padded
        # (tn,1) target block, plus headroom for f32 compute temporaries
        # (covers bf16 inputs promoted to f32 and the q*k product).
        per_row = 2 * (2 * d * itemsize + _TGT_LANE_BYTES) + 3 * d * 4
        tn = _VMEM_INPUT_BUDGET // per_row
        tn = max(8, (tn // 8) * 8)
    rows_per_core = _round_up(-(-n // p), 8)
    tn = min(tn, max(8, rows_per_core))
    nblocks = -(-n // tn)
    if nblocks < p:
        p = 1
    m = -(-nblocks // p)
    return tn, p, m, nblocks


def _make_kernel(n):
    """Kernel closure over the static row count n (for ragged-tail masking)."""

    def kernel(q_ref, k_ref, t_ref, out_ref, acc_ref):
        step = pl.program_id(1)                 # inner ("arbitrary") accumulation axis

        @pl.when(step == 0)
        def _init():
            acc_ref[...] = jnp.zeros_like(acc_ref)

        tn = q_ref.shape[0]
        # Logical (unclamped) row indices of this block.  The index_map clamps
        # the DMA so it never reads fully out of bounds; this mask discards
        # every row >= n (ragged last block and any clamped excess block).
        blk = pl.program_id(0) * pl.num_programs(1) + step
        row = blk * tn + lax.broadcasted_iota(jnp.int32, (tn, 1), 0)   # (TN, 1)
        valid = row < n

        q = q_ref[...].astype(jnp.float32)      # (TN, D)
        k = k_ref[...].astype(jnp.float32)      # (TN, D)
        t = t_ref[...]                          # (TN, 1) float32 labels

        # rst[i] = <query[i], key[i]>  (VPU multiply + lane reduce)
        rst = jnp.sum(q * k, axis=-1, keepdims=True)                   # (TN, 1)
        rst = jnp.where(valid, rst, 0.0)        # kill garbage rows before softplus

        # Stable BCE pieces: softplus(x) = max(x,0) + log(1 + exp(-|x|))
        #   -(1-t)*log(1-sigmoid(rst)) == (t==0) * softplus(rst)
        #   -t    *log(sigmoid(rst))   == (t==1) * softplus(-rst) = (t==1)*(sp-rst)
        sp = jnp.maximum(rst, 0.0) + jnp.log(1.0 + jnp.exp(-jnp.abs(rst)))
        pos = ((t == 1.0) & valid).astype(jnp.float32)                  # (TN, 1)
        neg = ((t == 0.0) & valid).astype(jnp.float32)                  # (TN, 1)

        # Reduce first (sublane reduces -> (1,1) each), then accumulate one vreg.
        l1 = jnp.sum(neg * sp, axis=0, keepdims=True)          # loss1 partial
        l2 = jnp.sum(pos * (sp - rst), axis=0, keepdims=True)  # loss2 partial
        pn = jnp.sum(pos, axis=0, keepdims=True)               # pos_num partial
        nn = jnp.sum(neg, axis=0, keepdims=True)               # neg_num partial
        rp = jnp.sum(pos * rst, axis=0, keepdims=True)         # sum rst over pos
        rn = jnp.sum(neg * rst, axis=0, keepdims=True)         # sum rst over neg

        acc_ref[...] += jnp.concatenate([l1, l2, pn, nn, rp, rn], axis=1)  # (1, 6)

        @pl.when(step == pl.num_programs(1) - 1)
        def _finalize():
            out_ref[...] = acc_ref[...].reshape(1, 1, 6)

    return kernel


@functools.partial(jax.jit, static_argnames=("tn_override",))
def _myloss_pallas(query, key, target, *, tn_override=None):
    n, d = query.shape
    itemsize = jnp.dtype(query.dtype).itemsize
    p = _default_core_split()
    tn, p, m, nblocks = _choose_tiling(n, d, itemsize, p, tn_override)

    t2d = target.reshape(n, 1).astype(jnp.float32)

    def row_block(pi, mi):
        # Clamp so a trailing excess block (possible only with the 2-core split
        # when ceil(n/tn) is odd) never DMAs fully out of bounds; its logical
        # rows are >= n and the in-kernel mask zeroes its contribution.
        return (jnp.minimum(pi * m + mi, nblocks - 1), 0)

    cost = pl.CostEstimate(
        flops=2 * n * d,
        transcendentals=2 * n,
        bytes_accessed=2 * n * d * itemsize + n * 4 + p * 6 * 4,
    )

    partials = pl.pallas_call(
        _make_kernel(n),
        out_shape=jax.ShapeDtypeStruct((p, 1, 6), jnp.float32),
        grid_spec=pltpu.PrefetchScalarGridSpec(
            num_scalar_prefetch=0,
            grid=(p, m),
            in_specs=[
                pl.BlockSpec((tn, d), row_block),
                pl.BlockSpec((tn, d), row_block),
                pl.BlockSpec((tn, 1), row_block),
            ],
            out_specs=pl.BlockSpec((1, 1, 6), lambda pi, mi: (pi, 0, 0)),
            scratch_shapes=[pltpu.VMEM((1, 6), jnp.float32)],
        ),
        compiler_params=pltpu.CompilerParams(
            dimension_semantics=("parallel", "arbitrary"),
            vmem_limit_bytes=_VMEM_LIMIT,
        ),
        cost_estimate=cost,
    )(query, key, t2d)

    sums = jnp.sum(partials.reshape(p, 6), axis=0)          # (6,)
    l1, l2, pn, nn, rp, rn = (sums[i] for i in range(6))
    loss = l1 / nn + l2 / pn
    pos_mean = rp / pn
    neg_mean = rn / nn
    return loss, pos_mean, neg_mean


def myloss(output, target, mode=None):
    """Pallas equivalent of Myloss.forward."""
    loss, pos_mean, neg_mean = _myloss_pallas(output["query"], output["key"], target)
    if mode == "test":
        return loss, pos_mean, neg_mean
    return loss


def _reference(query, key, target):
    q = query.astype(jnp.float32)
    k = key.astype(jnp.float32)
    t = target.astype(jnp.float32)
    rst = jnp.sum(q * k, axis=-1)
    sig = jax.nn.sigmoid(rst)
    pos_num = jnp.sum(t == 1.0)
    neg_num = jnp.sum(t == 0.0)
    loss1 = jnp.sum(-(1.0 - t) * jnp.log(1.0 - sig))
    loss2 = jnp.sum(-t * jnp.log(sig))
    loss = loss1 / neg_num + loss2 / pos_num
    pos_mean = jnp.sum(rst * (t == 1.0)) / pos_num
    neg_mean = jnp.sum(rst * (t == 0.0)) / neg_num
    return loss, pos_mean, neg_mean


def _make_inputs(seed, n, d):
    k0, k1, k2 = jax.random.split(jax.random.PRNGKey(seed), 3)
    query = jax.random.normal(k0, (n, d), dtype=jnp.float32) * 0.5
    key = jax.random.normal(k1, (n, d), dtype=jnp.float32) * 0.5
    target = (jax.random.uniform(k2, (n,)) > 0.5).astype(jnp.float32)
    # Guarantee at least one positive and one negative.
    target = target.at[0].set(1.0).at[1].set(0.0)
    return query, key, target


def _check(got, ref, what):
    assert jnp.allclose(got, ref, rtol=1e-4, atol=1e-5), (what, got, ref)


if __name__ == "__main__":
    # Case 1: small shapes consistent with the module (N=16 samples, D=32).
    q, k, t = _make_inputs(0, 16, 32)
    output = {"query": q, "key": k}
    loss = myloss(output, t)
    loss_t, pos_m, neg_m = myloss(output, t, mode="test")
    jax.block_until_ready((loss, loss_t, pos_m, neg_m))
    r_loss, r_pos, r_neg = _reference(q, k, t)
    _check(loss, r_loss, "case1 loss")
    _check(loss_t, r_loss, "case1 loss(test)")
    _check(pos_m, r_pos, "case1 pos_mean")
    _check(neg_m, r_neg, "case1 neg_mean")

    # Case 2: multi-step accumulation over the inner grid axis (N divisible).
    q2, k2, t2 = _make_inputs(1, 192, 64)
    l2_, p2_, n2_ = _myloss_pallas(q2, k2, t2, tn_override=32)
    jax.block_until_ready((l2_, p2_, n2_))
    r2l, r2p, r2n = _reference(q2, k2, t2)
    _check(l2_, r2l, "case2 loss")
    _check(p2_, r2p, "case2 pos_mean")
    _check(n2_, r2n, "case2 neg_mean")

    # Case 3: N not a multiple of the tile, single block -> padded-row masking.
    q3, k3, t3 = _make_inputs(2, 100, 48)
    l3_, p3_, n3_ = _myloss_pallas(q3, k3, t3)
    jax.block_until_ready((l3_, p3_, n3_))
    r3l, r3p, r3n = _reference(q3, k3, t3)
    _check(l3_, r3l, "case3 loss")
    _check(p3_, r3p, "case3 pos_mean")
    _check(n3_, r3n, "case3 neg_mean")

    # Case 4: multi-step accumulation AND a ragged last block (250 = 3*64 + 58).
    q4, k4, t4 = _make_inputs(3, 250, 40)
    l4_, p4_, n4_ = _myloss_pallas(q4, k4, t4, tn_override=64)
    jax.block_until_ready((l4_, p4_, n4_))
    r4l, r4p, r4n = _reference(q4, k4, t4)
    _check(l4_, r4l, "case4 loss")
    _check(p4_, r4p, "case4 pos_mean")
    _check(n4_, r4n, "case4 neg_mean")

    # Case 5: odd number of blocks (exercises the clamped index_map path when
    # the 2-core split is active on v7x; plain accumulation elsewhere).
    q5, k5, t5 = _make_inputs(4, 300, 32)
    l5_, p5_, n5_ = _myloss_pallas(q5, k5, t5, tn_override=64)
    jax.block_until_ready((l5_, p5_, n5_))
    r5l, r5p, r5n = _reference(q5, k5, t5)
    _check(l5_, r5l, "case5 loss")
    _check(p5_, r5p, "case5 pos_mean")
    _check(n5_, r5n, "case5 neg_mean")

    print("KERNEL_OK")
</pallas_src>

<mosaic_0001>
module attributes {stable_mosaic.version = 11 : i64} {
  func.func @kernel(%arg0: i32, %arg1: i32, %arg2: memref<16x32xf32, #tpu.memory_space<vmem>>, %arg3: memref<16x32xf32, #tpu.memory_space<vmem>>, %arg4: memref<16x1xf32, #tpu.memory_space<vmem>>, %arg5: memref<1x1x6xf32, #tpu.memory_space<vmem>>, %arg6: memref<1x6xf32, #tpu.memory_space<vmem>>) attributes {dimension_semantics = [#tpu.dimension_semantics<parallel>, #tpu.dimension_semantics<arbitrary>], iteration_bounds = array<i64: 1, 1>, scalar_prefetch = 0 : i64, scratch_operands = 1 : i64, tpu.core_type = #tpu.core_type<tc>, window_params = [{transform_indices = @transform_0, window_bounds = array<i64: 16, 32>}, {transform_indices = @transform_1, window_bounds = array<i64: 16, 32>}, {transform_indices = @transform_2, window_bounds = array<i64: 16, 1>}, {transform_indices = @transform_3, window_bounds = array<i64: 1, 1, 6>}]} {
    %c0_i32 = arith.constant 0 : i32
    %0 = arith.cmpi eq, %arg1, %c0_i32 : i32
    %1 = arith.extui %0 : i1 to i32
    %c0_i32_0 = arith.constant 0 : i32
    %2 = arith.cmpi ne, %1, %c0_i32_0 : i32
    scf.if %2 {
      %cst_25 = arith.constant 0.000000e+00 : f32
      %63 = vector.broadcast %cst_25 : f32 to vector<1x6xf32>
      %c0_26 = arith.constant 0 : index
      %c0_27 = arith.constant 0 : index
      %64 = vector.load %arg6[%c0_26, %c0_27] : memref<1x6xf32, #tpu.memory_space<vmem>>, vector<1x6xf32>
      tpu.vector_store %arg6[%c0_26, %c0_27], %63 {strides = array<i32>} : memref<1x6xf32, #tpu.memory_space<vmem>>, vector<1x6xf32>,
    } else {
    }
    %c1_i32 = arith.constant 1 : i32
    %3 = arith.muli %arg0, %c1_i32 : i32
    %4 = arith.addi %3, %arg1 : i32
    %c16_i32 = arith.constant 16 : i32
    %5 = arith.muli %4, %c16_i32 : i32
    %6 = tpu.iota {dimensions = array<i32: 0>} : vector<16x1xi32>
    %7 = vector.broadcast %5 : i32 to vector<16x1xi32>
    %8 = arith.addi %7, %6 : vector<16x1xi32>
    %c16_i32_1 = arith.constant 16 : i32
    %9 = vector.broadcast %c16_i32_1 : i32 to vector<16x1xi32>
    %10 = arith.cmpi slt, %8, %9 : vector<16x1xi32>
    %c0 = arith.constant 0 : index
    %c0_2 = arith.constant 0 : index
    %11 = vector.load %arg2[%c0, %c0_2] : memref<16x32xf32, #tpu.memory_space<vmem>>, vector<16x32xf32>
    %c0_3 = arith.constant 0 : index
    %c0_4 = arith.constant 0 : index
    %12 = vector.load %arg3[%c0_3, %c0_4] : memref<16x32xf32, #tpu.memory_space<vmem>>, vector<16x32xf32>
    %c0_5 = arith.constant 0 : index
    %c0_6 = arith.constant 0 : index
    %13 = vector.load %arg4[%c0_5, %c0_6] : memref<16x1xf32, #tpu.memory_space<vmem>>, vector<16x1xf32>
    %14 = arith.mulf %11, %12 : vector<16x32xf32>
    %cst = arith.constant dense<0.000000e+00> : vector<16xf32>
    %15 = vector.multi_reduction <add>, %14, %cst [1] : vector<16x32xf32> to vector<16xf32>
    %16 = vector.shape_cast %15 : vector<16xf32> to vector<16x1xf32>
    %cst_7 = arith.constant 0.000000e+00 : f32
    %17 = vector.broadcast %cst_7 : f32 to vector<16x1xf32>
    %18 = arith.select %10, %16, %17 : vector<16x1xi1>, vector<16x1xf32>
    %cst_8 = arith.constant 0.000000e+00 : f32
    %19 = vector.broadcast %cst_8 : f32 to vector<16x1xf32>
    %20 = arith.maximumf %18, %19 : vector<16x1xf32>
    %21 = math.absf %18 : vector<16x1xf32>
    %cst_9 = arith.constant 0.000000e+00 : f32
    %22 = vector.broadcast %cst_9 : f32 to vector<16x1xf32>
    %23 = arith.subf %22, %21 : vector<16x1xf32>
    %24 = math.exp %23 : vector<16x1xf32>
    %cst_10 = arith.constant 1.000000e+00 : f32
    %25 = vector.broadcast %cst_10 : f32 to vector<16x1xf32>
    %26 = arith.addf %25, %24 : vector<16x1xf32>
    %27 = math.log %26 : vector<16x1xf32>
    %28 = arith.addf %20, %27 : vector<16x1xf32>
    %cst_11 = arith.constant 1.000000e+00 : f32
    %29 = vector.broadcast %cst_11 : f32 to vector<16x1xf32>
    %30 = arith.cmpf oeq, %13, %29 : vector<16x1xf32>
    %31 = arith.andi %30, %10 : vector<16x1xi1>
    %32 = arith.extui %31 : vector<16x1xi1> to vector<16x1xi32>
    %33 = arith.sitofp %32 : vector<16x1xi32> to vector<16x1xf32>
    %cst_12 = arith.constant 0.000000e+00 : f32
    %34 = vector.broadcast %cst_12 : f32 to vector<16x1xf32>
    %35 = arith.cmpf oeq, %13, %34 : vector<16x1xf32>
    %36 = arith.andi %35, %10 : vector<16x1xi1>
    %37 = arith.extui %36 : vector<16x1xi1> to vector<16x1xi32>
    %38 = arith.sitofp %37 : vector<16x1xi32> to vector<16x1xf32>
    %39 = arith.mulf %38, %28 : vector<16x1xf32>
    %cst_13 = arith.constant dense<0.000000e+00> : vector<1xf32>
    %40 = vector.multi_reduction <add>, %39, %cst_13 [0] : vector<16x1xf32> to vector<1xf32>
    %41 = vector.shape_cast %40 : vector<1xf32> to vector<1x1xf32>
    %42 = arith.subf %28, %18 : vector<16x1xf32>
    %43 = arith.mulf %33, %42 : vector<16x1xf32>
    %cst_14 = arith.constant dense<0.000000e+00> : vector<1xf32>
    %44 = vector.multi_reduction <add>, %43, %cst_14 [0] : vector<16x1xf32> to vector<1xf32>
    %45 = vector.shape_cast %44 : vector<1xf32> to vector<1x1xf32>
    %cst_15 = arith.constant dense<0.000000e+00> : vector<1xf32>
    %46 = vector.multi_reduction <add>, %33, %cst_15 [0] : vector<16x1xf32> to vector<1xf32>
    %47 = vector.shape_cast %46 : vector<1xf32> to vector<1x1xf32>
    %cst_16 = arith.constant dense<0.000000e+00> : vector<1xf32>
    %48 = vector.multi_reduction <add>, %38, %cst_16 [0] : vector<16x1xf32> to vector<1xf32>
    %49 = vector.shape_cast %48 : vector<1xf32> to vector<1x1xf32>
    %50 = arith.mulf %33, %18 : vector<16x1xf32>
    %cst_17 = arith.constant dense<0.000000e+00> : vector<1xf32>
    %51 = vector.multi_reduction <add>, %50, %cst_17 [0] : vector<16x1xf32> to vector<1xf32>
    %52 = vector.shape_cast %51 : vector<1xf32> to vector<1x1xf32>
    %53 = arith.mulf %38, %18 : vector<16x1xf32>
    %cst_18 = arith.constant dense<0.000000e+00> : vector<1xf32>
    %54 = vector.multi_reduction <add>, %53, %cst_18 [0] : vector<16x1xf32> to vector<1xf32>
    %55 = vector.shape_cast %54 : vector<1xf32> to vector<1x1xf32>
    %c0_19 = arith.constant 0 : index
    %c0_20 = arith.constant 0 : index
    %56 = vector.load %arg6[%c0_19, %c0_20] : memref<1x6xf32, #tpu.memory_space<vmem>>, vector<1x6xf32>
    %57 = tpu.concatenate %41, %45, %47, %49, %52, %55 in 1 : vector<1x1xf32>, vector<1x1xf32>, vector<1x1xf32>, vector<1x1xf32>, vector<1x1xf32>, vector<1x1xf32> -> vector<1x6xf32>
    %58 = arith.addf %56, %57 : vector<1x6xf32>
    %c0_21 = arith.constant 0 : index
    %c0_22 = arith.constant 0 : index
    %59 = vector.load %arg6[%c0_21, %c0_22] : memref<1x6xf32, #tpu.memory_space<vmem>>, vector<1x6xf32>
    tpu.vector_store %arg6[%c0_21, %c0_22], %58 {strides = array<i32>} : memref<1x6xf32, #tpu.memory_space<vmem>>, vector<1x6xf32>,
    %c0_i32_23 = arith.constant 0 : i32
    %60 = arith.cmpi eq, %arg1, %c0_i32_23 : i32
    %61 = arith.extui %60 : i1 to i32
    %c0_i32_24 = arith.constant 0 : i32
    %62 = arith.cmpi ne, %61, %c0_i32_24 : i32
    scf.if %62 {
      %c0_25 = arith.constant 0 : index
      %c0_26 = arith.constant 0 : index
      %63 = vector.load %arg6[%c0_25, %c0_26] : memref<1x6xf32, #tpu.memory_space<vmem>>, vector<1x6xf32>
      %64 = vector.shape_cast %63 : vector<1x6xf32> to vector<1x1x6xf32>
      %c0_27 = arith.constant 0 : index
      %c0_28 = arith.constant 0 : index
      %c0_29 = arith.constant 0 : index
      %65 = vector.load %arg5[%c0_27, %c0_28, %c0_29] : memref<1x1x6xf32, #tpu.memory_space<vmem>>, vector<1x1x6xf32>
      tpu.vector_store %arg5[%c0_27, %c0_28, %c0_29], %64 {strides = array<i32>} : memref<1x1x6xf32, #tpu.memory_space<vmem>>, vector<1x1x6xf32>,
    } else {
    }
    return
  }
  func.func @transform_0(%arg0: i32, %arg1: i32) -> (i32, i32) {
    %c1_i32 = arith.constant 1 : i32
    %0 = arith.muli %arg0, %c1_i32 : i32
    %1 = arith.addi %0, %arg1 : i32
    %c0_i32 = arith.constant 0 : i32
    %2 = arith.minsi %1, %c0_i32 : i32
    %c0_i32_0 = arith.constant 0 : i32
    %c0_i32_1 = arith.constant 0 : i32
    return %2, %c0_i32_0 : i32, i32
  }
  func.func @transform_1(%arg0: i32, %arg1: i32) -> (i32, i32) {
    %c1_i32 = arith.constant 1 : i32
    %0 = arith.muli %arg0, %c1_i32 : i32
    %1 = arith.addi %0, %arg1 : i32
    %c0_i32 = arith.constant 0 : i32
    %2 = arith.minsi %1, %c0_i32 : i32
    %c0_i32_0 = arith.constant 0 : i32
    %c0_i32_1 = arith.constant 0 : i32
    return %2, %c0_i32_0 : i32, i32
  }
  func.func @transform_2(%arg0: i32, %arg1: i32) -> (i32, i32) {
    %c1_i32 = arith.constant 1 : i32
    %0 = arith.muli %arg0, %c1_i32 : i32
    %1 = arith.addi %0, %arg1 : i32
    %c0_i32 = arith.constant 0 : i32
    %2 = arith.minsi %1, %c0_i32 : i32
    %c0_i32_0 = arith.constant 0 : i32
    %c0_i32_1 = arith.constant 0 : i32
    return %2, %c0_i32_0 : i32, i32
  }
  func.func @transform_3(%arg0: i32, %arg1: i32) -> (i32, i32, i32) {
    %c0_i32 = arith.constant 0 : i32
    %c0_i32_0 = arith.constant 0 : i32
    %c0_i32_1 = arith.constant 0 : i32
    return %arg0, %c0_i32, %c0_i32_0 : i32, i32, i32
  }
}

</mosaic_0001>

<bundles_post_ra>
// kernel: _myloss_pallas.1
= control target key start
LH: loop header
LB: loop body
LE: loop exit
PB: predicated region body
PF: predicated region fallthrough
CT: control target
= control target key end

     0   :  { %8 = vsyncpa [#allocation4], 0  ;;  %s336_s12 = smov [#allocation3]   ;;  %s423_s0 = inlined_call_operand.vmem [shape: f32[16,32], index: 0, kind: input, shape index: {}]   ;;  %s424_s1 = inlined_call_operand.hbm [shape: f32[16,32], index: 1, kind: input, shape index: {}]   ;;  %s425_s2 = inlined_call_operand.vmem [shape: f32[16,1], index: 2, kind: input, shape index: {}]   ;;  %s426_s3 = inlined_call_operand.vmem [shape: f32[1,1,6], index: 3, kind: output, shape index: {}]  }
   0x1   :  { %s34_s13 = sshll.u32 %s336_s12, 4  ;;  %s312_s16 = scalar_lea.hbm %s424_s1, 256  ;;  %s35_s13 = int_to_ptr.vmem [resolvable:$true] %s34_s13 }
   0x2   :  { %p313_p0 = scmp.ne.s32.totalorder %s424_s1, %s312_s16  ;;  %p316_p1 = scmp.lt.u32.totalorder %s312_s16, %s424_s1 }
   0x4   :  { %p318_p2 = pnand %p316_p1, %p313_p0 }
   0x6   :  { %321 = shalt.err (!%p318_p2)
}
   0x7   :  { %s322_s21 = scalar_lea.vmem %s35_s13, 256  ;;  %p327_p4 = scmp.lt.s32.totalorder %s35_s13, %s35_s13 }
   0x8   :  { %p323_p3 = scmp.ne.s32.totalorder %s35_s13, %s322_s21  ;;  %p328_p5 = scmp.lt.s32.totalorder %s322_s21, %s322_s21 }
   0xa   :  { %p329_p6 = por %p328_p5, %p327_p4 }
   0xc   :  { %p330_p7 = pnand %p329_p6, %p323_p3 }
   0xe   :  { %333 = shalt.err (!%p330_p7)
}
   0xf   :  { %s337_s22 = smov 128   ;;  %s338_s23 = smov 8  }
  0x10   :  { %40 = dma.hbm_to_vmem [thread:$0]  %s424_s1, 256, %s35_s13, [#allocation4], %s337_s22, %s337_s22, %s338_s23  }
  0x11   :  { %334 = dma.done.wait [#allocation4], 256  }
  0x12   :  { %335 = vsyncadd [#allocation4], 4294967040  ;;  %v118_v0 = vld [vmem:[%s423_s0] sm:$0xff]  ;;  %vm126_vm0 = vcmask 261120   ;;  %v119_v2 = vld [vmem:[%s423_s0 + $0x8] sm:$0xff]  ;;  %vm171_vm2 = vcmask 7168  }
  0x13   :  { %v120_v1 = vld [vmem:[#allocation3] sm:$0xff]  ;;  %v121_v4 = vld [vmem:[#allocation3 + $0x8] sm:$0xff]  ;;  %v339_v10 = vmov 0.0   ;;  %s340_s0 = smov 2   ;;  %s342_s6 = smov 4   ;;  %vm106_vm6 = vcmask 40960  }
  0x14   :  { %v124_v3 = vmul.f32 %v120_v1, %v118_v0  ;;  %v125_v5 = vmul.f32 %v121_v4, %v119_v2  ;;  %v122_v8 = vld [vmem:[%s425_s2] sm:$0xff]  ;;  %v123_v9 = vld [vmem:[%s425_s2 + $0x8] sm:$0xff]  ;;  %s341_s2 = smov 3   ;;  %107 = vst.msk [vmem:[#allocation2] sm:$0x1] %vm106_vm6, %v339_v10  ;;  %s343_s7 = smov 1  }
  0x15   :  { %vm153_vm1 = vcmp.eq.f32.partialorder %v122_v8, 1.0  ;;  %vm154_vm3 = vcmp.eq.f32.partialorder %v123_v9, 1.0  ;;  %vm161_vm4 = vcmp.eq.f32.partialorder %v122_v8, 0.0  ;;  %vm162_vm5 = vcmp.eq.f32.partialorder %v123_v9, 0.0  ;;  %s344_s8 = smov 5  }
  0x16   :  { %v127_v6 = vsel %vm126_vm0, %v124_v3, 0.0  ;;  %v130_v7 = vsel %vm126_vm0, %v125_v5, 0.0  ;;  %v390_v11 = vsel %vm154_vm3, 1.0, %v339_v10  ;;  %v393_v12 = vsel %vm153_vm1, 1.0, %v339_v10 }
  0x17   :  { %128 = vadd.xlane.f32.xlu0 %v127_v6  ;;  %v194_v13 = vsel %vm171_vm2, %v393_v12, 0.0  ;;  %v195_v14 = vsel %vm171_vm2, %v390_v11, 0.0  ;;  %v293_v22 = vsel %vm161_vm4, 1.0, %v339_v10  ;;  %v294_v23 = vsel %vm162_vm5, 1.0, %v339_v10 }
  0x18   :  { %v196_v15 = vadd.f32 %v195_v14, %v194_v13  ;;  %v203_v24 = vsel %vm171_vm2, %v293_v22, 0.0  ;;  %v204_v25 = vsel %vm171_vm2, %v294_v23, 0.0  ;;  %vm256_vm7 = vcmask 15360  }
  0x19   :  { %v205_v26 = vadd.f32 %v204_v25, %v203_v24  ;;  %vm258_vm8 = vcmask 23552   ;;  %vm260_vm9 = vcmask 31744   ;;  %vm262_vm10 = vcmask 39936  }
  0x1a   :  { %v197_v16 = vrot.slane %v196_v15, 4 }
  0x1b   :  { %131 = vadd.xlane.f32.xlu0 %v130_v7  ;;  %v206_v27 = vrot.slane %v205_v26, 4 }
  0x1c   :  { %v198_v17 = vadd.f32 %v197_v16, %v196_v15 }
  0x1d   :  { %v207_v28 = vadd.f32 %v206_v27, %v205_v26 }
  0x1e   :  { %v199_v18 = vrot.slane %v198_v17, 2 }
  0x1f   :  { %v208_v29 = vrot.slane %v207_v28, 2 }
  0x20   :  { %v200_v19 = vadd.f32 %v199_v18, %v198_v17 }
  0x21   :  { %v209_v30 = vadd.f32 %v208_v29, %v207_v28 }
  0x22   :  { %v201_v20 = vrot.slane %v200_v19, 1 }
  0x23   :  { %v210_v31 = vrot.slane %v209_v30, 1 }
  0x24   :  { %v202_v21 = vadd.f32 %v201_v20, %v200_v19 }
  0x25   :  { %v211_v32 = vadd.f32 %v210_v31, %v209_v30 }
  0x26   :  { %240 = vrot.lane.b32.xlu1 %v202_v21, %s340_s0 }
  0x31   :  { %244 = vrot.lane.b32.xlu0 %v211_v32, %s341_s2 }
  0x98   :  { %v241_v10 = vpop.permute.xlu1 %240 }
  0xa4   :  { %v129_v33 = vpop.xlane.xlu0 %128 }
  0xa5   :  { %v137_v34 = vand.u32 2147483647, %v129_v33  ;;  %v212_v36 = vmul.f32 %v393_v12, %v129_v33  ;;  %v135_v58 = vmax.f32 %v129_v33, 0.0  ;;  %v223_v60 = vmul.f32 %v293_v22, %v129_v33 }
  0xa7   :  { %v139_v35 = vsub.f32 0.0, %v137_v34  ;;  %v214_v41 = vsel %vm171_vm2, %v212_v36, 0.0  ;;  %v225_v1 = vsel %vm171_vm2, %v223_v60, 0.0 }
  0xa8   :  { %v132_v37 = vpop.xlane.xlu0 %131 }
  0xa9   :  { %v141_v38 = vmul.f32 1.442695, %v139_v35  ;;  %v138_v39 = vand.u32 2147483647, %v132_v37  ;;  %v213_v40 = vmul.f32 %v390_v11, %v132_v37  ;;  %v224_v56 = vmul.f32 %v294_v23, %v132_v37 }
  0xaa   :  { %v136_v2 = vmax.f32 %v132_v37, 0.0 }
  0xab   :  { %304 = vpow2.f32 %v141_v38  ;;  %v140_v42 = vsub.f32 0.0, %v138_v39  ;;  %v215_v43 = vsel %vm171_vm2, %v213_v40, 0.0  ;;  %v226_v62 = vsel %vm171_vm2, %v224_v56, 0.0 }
  0xac   :  { %v216_v44 = vadd.f32 %v215_v43, %v214_v41  ;;  %v227_v4 = vadd.f32 %v226_v62, %v225_v1  ;;  %v245_v38 = vpop.permute.xlu0 %244 }
  0xad   :  { %v143_v45 = vmul.f32 1.442695, %v140_v42  ;;  %v234_v42 = vld [vmem:[#allocation2] sm:$0x1] }
  0xae   :  { %v217_v46 = vrot.slane %v216_v44, 4  ;;  %v228_v13 = vrot.slane %v227_v4, 4 }
  0xaf   :  { %306 = vpow2.f32 %v143_v45 }
  0xb0   :  { %v218_v47 = vadd.f32 %v217_v46, %v216_v44 }
  0xb2   :  { %v219_v48 = vrot.slane %v218_v47, 2 }
  0xb4   :  { %v220_v49 = vadd.f32 %v219_v48, %v218_v47 }
  0xb5   :  { %v305_v50 = vpop.eup %304 }
  0xb6   :  { %v145_v51 = vadd.f32 1.0, %v305_v50  ;;  %v221_v52 = vrot.slane %v220_v49, 1 }
  0xb8   :  { %308 = vlog2.f32 %v145_v51  ;;  %v222_v53 = vadd.f32 %v221_v52, %v220_v49 }
  0xb9   :  { %v307_v54 = vpop.eup %306 }
  0xba   :  { %v146_v55 = vadd.f32 1.0, %v307_v54  ;;  %248 = vrot.lane.b32.xlu1 %v222_v53, %s342_s6 }
  0xbc   :  { %310 = vlog2.f32 %v146_v55 }
  0xc2   :  { %v309_v57 = vpop.eup %308 }
  0xc3   :  { %v148_v59 = vmul.f32 0.6931472, %v309_v57 }
  0xc5   :  { %v151_v61 = vadd.f32 %v148_v59, %v135_v58 }
  0xc6   :  { %v311_v63 = vpop.eup %310 }
  0xc7   :  { %v181_v0 = vsub.f32 %v151_v61, %v129_v33  ;;  %v150_v3 = vmul.f32 0.6931472, %v311_v63  ;;  %v169_v5 = vmul.f32 %v293_v22, %v151_v61 }
  0xc9   :  { %v152_v6 = vadd.f32 %v150_v3, %v136_v2  ;;  %v183_v7 = vmul.f32 %v393_v12, %v181_v0  ;;  %v172_v15 = vsel %vm171_vm2, %v169_v5, 0.0  ;;  %v229_v12 = vadd.f32 %v228_v13, %v227_v4 }
  0xcb   :  { %v170_v8 = vmul.f32 %v294_v23, %v152_v6  ;;  %v182_v9 = vsub.f32 %v152_v6, %v132_v37  ;;  %v185_v18 = vsel %vm171_vm2, %v183_v7, 0.0  ;;  %v230_v23 = vrot.slane %v229_v12, 2 }
  0xcd   :  { %v184_v14 = vmul.f32 %v390_v11, %v182_v9  ;;  %v173_v16 = vsel %vm171_vm2, %v170_v8, 0.0  ;;  %v231_v25 = vadd.f32 %v230_v23, %v229_v12 }
  0xce   :  { %v174_v17 = vadd.f32 %v173_v16, %v172_v15 }
  0xcf   :  { %v186_v19 = vsel %vm171_vm2, %v184_v14, 0.0  ;;  %v232_v28 = vrot.slane %v231_v25, 1 }
  0xd0   :  { %v187_v20 = vadd.f32 %v186_v19, %v185_v18  ;;  %v175_v30 = vrot.slane %v174_v17, 4 }
  0xd1   :  { %v233_v29 = vadd.f32 %v232_v28, %v231_v25 }
  0xd2   :  { %v188_v21 = vrot.slane %v187_v20, 4  ;;  %v176_v31 = vadd.f32 %v175_v30, %v174_v17 }
  0xd4   :  { %v189_v22 = vadd.f32 %v188_v21, %v187_v20  ;;  %v177_v32 = vrot.slane %v176_v31, 2 }
  0xd6   :  { %v190_v24 = vrot.slane %v189_v22, 2  ;;  %v178_v33 = vadd.f32 %v177_v32, %v176_v31 }
  0xd8   :  { %v191_v11 = vadd.f32 %v190_v24, %v189_v22  ;;  %v179_v34 = vrot.slane %v178_v33, 1 }
  0xda   :  { %v192_v26 = vrot.slane %v191_v11, 1  ;;  %v180_v36 = vadd.f32 %v179_v34, %v178_v33 }
  0xdc   :  { %v193_v27 = vadd.f32 %v192_v26, %v191_v11 }
  0xde   :  { %236 = vrot.lane.b32.xlu1 %v193_v27, %s343_s7 }
  0xe2   :  { %252 = vrot.lane.b32.xlu1 %v233_v29, %s344_s8 }
 0x12c   :  { %v249_v35 = vpop.permute.xlu1 %248 }
 0x150   :  { %v237_v37 = vpop.permute.xlu1 %236 }
 0x151   :  { %v255_v39 = vsel %vm171_vm2, %v180_v36, %v237_v37 }
 0x152   :  { %v257_v40 = vsel %vm256_vm7, %v255_v39, %v241_v10 }
 0x153   :  { %v259_v41 = vsel %vm258_vm8, %v257_v40, %v245_v38 }
 0x154   :  { %v253_v43 = vpop.permute.xlu1 %252  ;;  %v261_v44 = vsel %vm260_vm9, %v259_v41, %v249_v35 }
 0x155   :  { %v263_v45 = vsel %vm262_vm10, %v261_v44, %v253_v43 }
 0x156   :  { %v264_v46 = vadd.f32 %v263_v45, %v234_v42 }
 0x158   :  { %266 = vst.msk [vmem:[#allocation2] sm:$0x1] %vm106_vm6, %v264_v46 }
 0x15f   :  { %v270_v47 = vld [vmem:[#allocation2] sm:$0x1] }
 0x160   :  { %271 = vst.msk [vmem:[%s426_s3] sm:$0x1] %vm106_vm6, %v270_v47 }
 0x161   :  { %276 = vsyncpa [#allocation4], 1 }

</bundles_post_ra>
